<compile_context>
chip_gen: v5e
topology: v5e:2x2
jax: 0.10.0
libtpu: 0.0.40
codegen_flags: <defaults>
</compile_context>

<pallas_src>
import functools

import jax
import jax.numpy as jnp
from jax.experimental import pallas as pl
from jax.experimental.pallas import tpu as pltpu


def _mlp_kernel(loss_mode, n_layers, vpu_last, n_valid, block_n, inv_scale,
                padded, use_bf16, *refs):
    # refs = (x_ref, w0, b0, w1, b1, ..., y_ref, preds_ref, loss_ref)
    x_ref = refs[0]
    param_refs = refs[1:1 + 2 * n_layers]
    y_ref = refs[1 + 2 * n_layers]
    preds_ref = refs[2 + 2 * n_layers]
    loss_ref = refs[3 + 2 * n_layers]

    mm_dtype = jnp.bfloat16 if use_bf16 else jnp.float32

    # --- MLP chain.  Hidden activations are transposed (features, block_n): the batch
    # sits on the 128-wide lane axis so every matmul feeds the MXU full rows and every
    # store is lane-dense.  x itself is consumed in its natural (block_n, dx) layout.
    x = x_ref[...].astype(mm_dtype)                           # (bn, dx)
    h = None
    for li in range(n_layers):
        w = param_refs[2 * li][...]
        b = param_refs[2 * li + 1][...].astype(jnp.float32)   # (out, 1)
        is_first = li == 0
        is_last = li == n_layers - 1
        if is_first:
            # w is (out, dx), x is (bn, dx): contract dx on both -> (out, bn).
            h = jax.lax.dot_general(
                w.astype(mm_dtype), x, (((1,), (1,)), ((), ())),
                preferred_element_type=jnp.float32) + b
        elif is_last and vpu_last:
            # dy == 1: VPU broadcast-multiply + XLU sublane reduce instead of an M=1
            # MXU matmul.  w stays in its natural (d_in, 1) column layout.
            h = jnp.sum(w.astype(jnp.float32) * h, axis=0, keepdims=True) + b
        else:
            h = jnp.dot(w.astype(mm_dtype), h.astype(mm_dtype),
                        preferred_element_type=jnp.float32) + b
        if not is_last:
            h = jnp.maximum(h, 0.0)                           # ReLU

    y_t = y_ref[...].astype(jnp.float32)                      # (dy, bn), lane-dense

    if loss_mode == "l2":
        preds = h
        d = h - y_t
        elem = d * d
    elif loss_mode == "bce":
        # Stable logit-form BCE (matches torch.nn.BCELoss incl. the -100 clamp):
        #   log(sigmoid(h))   = -(relu(-h) + log(1 + exp(-|h|)))
        #   log(1-sigmoid(h)) = -(relu( h) + log(1 + exp(-|h|)))
        t = jnp.log(1.0 + jnp.exp(-jnp.abs(h)))
        logp = jnp.maximum(-(jnp.maximum(-h, 0.0) + t), -100.0)
        log1mp = jnp.maximum(-(jnp.maximum(h, 0.0) + t), -100.0)
        preds = jnp.exp(logp)          # == sigmoid(h) inside the clamp region
        elem = -(y_t * logp + (1.0 - y_t) * log1mp)
    else:
        raise KeyError(f"MLP model does not have {loss_mode} loss.")

    if padded:
        # Zero the loss contribution of padded batch rows (lane axis = batch).
        col = (jax.lax.broadcasted_iota(jnp.int32, (1, block_n), 1)
               + pl.program_id(0) * block_n)
        elem = jnp.where(col < n_valid, elem, 0.0)

    preds_ref[...] = preds.astype(preds_ref.dtype)            # (dy, bn) lane-dense store
    # Per-tile, pre-scaled loss partial: a single (1, 1) scalar per grid step.
    loss_ref[...] = jnp.sum(elem, axis=(0, 1), keepdims=True) * inv_scale


def _choose_block_n(n_pad, dims, vmem_budget_bytes=16 << 20):
    """Lane-aligned batch tile: as large as the VMEM budget allows, capped at 1024
    rows, and >= 2 tiles once N >= 256 so ("parallel",) can use both v7x cores."""
    m = n_pad // 128
    if m <= 1:
        return n_pad
    max_units = min(m // 2, 8)                  # >= 2 tiles; tile <= 1024 rows
    dx, dy = dims[0], dims[-1]
    feat = max(dims)
    # Resident (double-buffered) params + per-row cost of x/y/preds tiles & live h.
    w_bytes = 2 * 4 * sum(dims[i] * dims[i + 1] + dims[i + 1]
                          for i in range(len(dims) - 1))
    row_bytes = 4 * (2 * dx + 4 * dy + 3 * feat)
    fit = max(1, (vmem_budget_bytes - w_bytes) // (128 * row_bytes))
    max_units = max(1, min(max_units, fit))
    for u in range(max_units, 0, -1):
        if m % u == 0:
            return 128 * u
    return 128


def mlp_forward_pallas(x, y, params, loss="l2", block_n=None, use_bf16=False):
    """x: (1, N, dx), y: (1, N, dy), params: list of (W[in, out], b[out])."""
    _, n, dx = x.shape
    dy = y.shape[-1]
    n_layers = len(params)
    dims = [dx] + [w.shape[1] for w, _ in params]       # [dx, dh..., dy]

    n_pad = ((n + 127) // 128) * 128                    # keep the lane axis 128-aligned
    if block_n is None:
        block_n = _choose_block_n(n_pad, dims)
    assert n_pad % block_n == 0 and (block_n % 128 == 0 or block_n == n_pad)
    num_tiles = n_pad // block_n
    padded = n_pad != n

    if padded:
        x = jnp.pad(x, ((0, 0), (0, n_pad - n), (0, 0)))
        y = jnp.pad(y, ((0, 0), (0, n_pad - n), (0, 0)))

    # Lane-dense (dy, N) targets.  For dy == 1 this is a pure reshape (no data movement).
    yT = y.reshape(1, n_pad) if dy == 1 else y.reshape(n_pad, dy).T

    use_vpu_last = (dy == 1 and n_layers > 1)

    flat_params, param_specs = [], []
    for li, (w, b) in enumerate(params):
        if li == n_layers - 1 and use_vpu_last:
            wk = w                      # (d_in, 1) column, consumed by the VPU path
        else:
            wk = w.T                    # (out, in): canonical MXU lhs
        bk = b.reshape(-1, 1)           # (out, 1)
        flat_params += [wk, bk]
        # Full-array blocks with constant index maps -> fetched once, stay resident.
        param_specs += [pl.BlockSpec(wk.shape, lambda i: (0, 0)),
                        pl.BlockSpec(bk.shape, lambda i: (0, 0))]

    in_specs = (
        [pl.BlockSpec((None, block_n, dx), lambda i: (0, i, 0))]   # x, natural layout
        + param_specs
        + [pl.BlockSpec((dy, block_n), lambda i: (0, i))]          # y, lane-dense
    )
    out_specs = (
        pl.BlockSpec((dy, block_n), lambda i: (0, i)),             # preds, lane-dense
        pl.BlockSpec((None, 1, 1), lambda i: (i, 0, 0)),           # per-tile loss scalar
    )
    out_shape = (
        jax.ShapeDtypeStruct((dy, n_pad), x.dtype),
        jax.ShapeDtypeStruct((num_tiles, 1, 1), jnp.float32),
    )

    kernel = functools.partial(_mlp_kernel, loss, n_layers, use_vpu_last,
                               n, block_n, 1.0 / (n * dy), padded, use_bf16)

    predsT, loss_tiles = pl.pallas_call(
        kernel,
        grid=(num_tiles,),
        in_specs=in_specs,
        out_specs=out_specs,
        out_shape=out_shape,
        compiler_params=pltpu.CompilerParams(
            # No cross-step dependency -> batch axis can be sharded over both
            # TensorCores on v7x; neutral on v5e/v6e.
            dimension_semantics=("parallel",),
            # Explicit scoped-VMEM headroom (v5e default is only 16 MiB).
            vmem_limit_bytes=32 * 1024 * 1024,
        ),
    )(x, *flat_params, yT)

    # (dy, N) -> (N, dy).  For dy == 1 this is just a reshape of the same buffer.
    preds = predsT.reshape(n_pad, 1) if dy == 1 else predsT.T
    if padded:
        preds = preds[:n]
    # Loss was fully reduced + scaled in-kernel; grid=(1,) needs no wrapper reduce.
    loss_val = loss_tiles.reshape(()) if num_tiles == 1 else loss_tiles.sum()
    return preds, loss_val


def mlp_forward_reference(x, y, params, loss="l2"):
    """Pure-JAX reference with PyTorch semantics (sigmoid -> log -> clamp for BCE)."""
    x2 = x.reshape(x.shape[1], x.shape[2])
    y2 = y.reshape(y.shape[1], y.shape[2])
    h = x2
    for i, (w, b) in enumerate(params):
        h = h @ w + b
        if i < len(params) - 1:
            h = jnp.maximum(h, 0.0)
    if loss == "l2":
        preds = h
        l = jnp.mean((preds - y2) ** 2)
    else:
        preds = jax.nn.sigmoid(h)
        l = -jnp.mean(
            y2 * jnp.maximum(jnp.log(preds), -100.0)
            + (1.0 - y2) * jnp.maximum(jnp.log(1.0 - preds), -100.0)
        )
    return preds, l


def init_mlp_params(key, dim_x, dim_y, dim_hid):
    """Deterministic init. Weights stored as (in, out) == W_pytorch.T."""
    dims = [dim_x] + list(dim_hid) + [dim_y]
    params = []
    for i in range(len(dims) - 1):
        d_in, d_out = dims[i], dims[i + 1]
        key, kw, kb = jax.random.split(key, 3)
        bound = 1.0 / jnp.sqrt(d_in)  # matches nn.Linear uniform bound
        w = jax.random.uniform(kw, (d_in, d_out), jnp.float32, -bound, bound)
        b = jax.random.uniform(kb, (d_out,), jnp.float32, -bound, bound)
        params.append((w, b))
    return params


if __name__ == "__main__":
    key = jax.random.PRNGKey(0)

    # Small, forward-consistent shapes.
    N, dim_x, dim_y = 128, 32, 1
    dim_hid = [64, 32]

    key, kx, ky, kp = jax.random.split(key, 4)
    x = jax.random.normal(kx, (1, N, dim_x), jnp.float32)          # batch.x
    y_l2 = jax.random.normal(ky, (1, N, dim_y), jnp.float32)       # batch.y (l2)
    y_bce = jax.random.bernoulli(ky, 0.5, (1, N, dim_y)).astype(jnp.float32)

    params = init_mlp_params(kp, dim_x, dim_y, dim_hid)

    # --- L2 (MSE), single-tile grid=(1,) path: loss fully reduced in-kernel ---
    preds, loss_val = mlp_forward_pallas(x, y_l2, params, loss="l2")
    preds = jax.block_until_ready(preds)
    loss_val = jax.block_until_ready(loss_val)
    preds_ref, loss_ref = mlp_forward_reference(x, y_l2, params, loss="l2")
    assert preds.shape == preds_ref.shape
    assert jnp.allclose(preds, preds_ref, rtol=1e-5, atol=1e-5)
    assert jnp.allclose(loss_val, loss_ref, rtol=1e-5, atol=1e-5)

    # --- BCE path ---
    preds_b, loss_b = mlp_forward_pallas(x, y_bce, params, loss="bce")
    preds_b = jax.block_until_ready(preds_b)
    loss_b = jax.block_until_ready(loss_b)
    preds_bref, loss_bref = mlp_forward_reference(x, y_bce, params, loss="bce")
    assert jnp.allclose(preds_b, preds_bref, rtol=1e-5, atol=1e-5)
    assert jnp.allclose(loss_b, loss_bref, rtol=1e-5, atol=1e-5)

    # --- Multi-tile + padded batch (N not a multiple of 128): exercises the per-tile
    #     partial-loss path and the padding mask ---
    N2 = 300
    key, kx2, ky2 = jax.random.split(key, 3)
    x2 = jax.random.normal(kx2, (1, N2, dim_x), jnp.float32)
    y2 = jax.random.bernoulli(ky2, 0.5, (1, N2, dim_y)).astype(jnp.float32)
    preds2, loss2 = mlp_forward_pallas(x2, y2, params, loss="bce")
    preds2 = jax.block_until_ready(preds2)
    loss2 = jax.block_until_ready(loss2)
    preds2_ref, loss2_ref = mlp_forward_reference(x2, y2, params, loss="bce")
    assert preds2.shape == preds2_ref.shape
    assert jnp.allclose(preds2, preds2_ref, rtol=1e-5, atol=1e-5)
    assert jnp.allclose(loss2, loss2_ref, rtol=1e-5, atol=1e-5)

    print("KERNEL_OK")
</pallas_src>

<mosaic_0001>
module attributes {stable_mosaic.version = 11 : i64} {
  func.func @_mlp_kernel(%arg0: i32, %arg1: memref<1x128x32xf32, #tpu.memory_space<vmem>>, %arg2: memref<64x32xf32, #tpu.memory_space<vmem>>, %arg3: memref<64x1xf32, #tpu.memory_space<vmem>>, %arg4: memref<32x64xf32, #tpu.memory_space<vmem>>, %arg5: memref<32x1xf32, #tpu.memory_space<vmem>>, %arg6: memref<32x1xf32, #tpu.memory_space<vmem>>, %arg7: memref<1x1xf32, #tpu.memory_space<vmem>>, %arg8: memref<1x128xf32, #tpu.memory_space<vmem>>, %arg9: memref<1x128xf32, #tpu.memory_space<vmem>>, %arg10: memref<1x1x1xf32, #tpu.memory_space<vmem>>) attributes {dimension_semantics = [#tpu.dimension_semantics<parallel>], iteration_bounds = array<i64: 1>, scalar_prefetch = 0 : i64, scratch_operands = 0 : i64, tpu.core_type = #tpu.core_type<tc>, window_params = [{transform_indices = @transform_0, window_bounds = array<i64: 1, 128, 32>}, {pipeline_mode = #tpu.pipeline_mode<synchronous>, transform_indices = @transform_1, window_bounds = array<i64: 64, 32>}, {pipeline_mode = #tpu.pipeline_mode<synchronous>, transform_indices = @transform_2, window_bounds = array<i64: 64, 1>}, {pipeline_mode = #tpu.pipeline_mode<synchronous>, transform_indices = @transform_3, window_bounds = array<i64: 32, 64>}, {pipeline_mode = #tpu.pipeline_mode<synchronous>, transform_indices = @transform_4, window_bounds = array<i64: 32, 1>}, {pipeline_mode = #tpu.pipeline_mode<synchronous>, transform_indices = @transform_5, window_bounds = array<i64: 32, 1>}, {pipeline_mode = #tpu.pipeline_mode<synchronous>, transform_indices = @transform_6, window_bounds = array<i64: 1, 1>}, {transform_indices = @transform_7, window_bounds = array<i64: 1, 128>}, {transform_indices = @transform_8, window_bounds = array<i64: 1, 128>}, {transform_indices = @transform_9, window_bounds = array<i64: 1, 1, 1>}]} {
    %c0 = arith.constant 0 : index
    %c0_0 = arith.constant 0 : index
    %c0_1 = arith.constant 0 : index
    %0 = vector.load %arg1[%c0, %c0_0, %c0_1] : memref<1x128x32xf32, #tpu.memory_space<vmem>>, vector<1x128x32xf32>
    %1 = vector.shape_cast %0 : vector<1x128x32xf32> to vector<128x32xf32>
    %c0_2 = arith.constant 0 : index
    %c0_3 = arith.constant 0 : index
    %2 = vector.load %arg2[%c0_2, %c0_3] : memref<64x32xf32, #tpu.memory_space<vmem>>, vector<64x32xf32>
    %c0_4 = arith.constant 0 : index
    %c0_5 = arith.constant 0 : index
    %3 = vector.load %arg3[%c0_4, %c0_5] : memref<64x1xf32, #tpu.memory_space<vmem>>, vector<64x1xf32>
    %cst = arith.constant dense<0.000000e+00> : vector<64x128xf32>
    %4 = tpu.matmul %2, %1, %cst {dimension_numbers = #tpu.dot_dimension_numbers<[1], [1], [0], [0], [0, 0, 1, 0], [], []>} : vector<64x32xf32>, vector<128x32xf32>, vector<64x128xf32> -> vector<64x128xf32>
    %5 = vector.broadcast %3 : vector<64x1xf32> to vector<64x128xf32>
    %6 = arith.addf %4, %5 : vector<64x128xf32>
    %cst_6 = arith.constant 0.000000e+00 : f32
    %7 = vector.broadcast %cst_6 : f32 to vector<64x128xf32>
    %8 = arith.maximumf %6, %7 : vector<64x128xf32>
    %c0_7 = arith.constant 0 : index
    %c0_8 = arith.constant 0 : index
    %9 = vector.load %arg4[%c0_7, %c0_8] : memref<32x64xf32, #tpu.memory_space<vmem>>, vector<32x64xf32>
    %c0_9 = arith.constant 0 : index
    %c0_10 = arith.constant 0 : index
    %10 = vector.load %arg5[%c0_9, %c0_10] : memref<32x1xf32, #tpu.memory_space<vmem>>, vector<32x1xf32>
    %cst_11 = arith.constant dense<0.000000e+00> : vector<32x128xf32>
    %11 = tpu.matmul %9, %8, %cst_11 {dimension_numbers = #tpu.dot_dimension_numbers<[1], [0], [0], [1], [0, 0, 1, 1], [], []>} : vector<32x64xf32>, vector<64x128xf32>, vector<32x128xf32> -> vector<32x128xf32>
    %12 = vector.broadcast %10 : vector<32x1xf32> to vector<32x128xf32>
    %13 = arith.addf %11, %12 : vector<32x128xf32>
    %cst_12 = arith.constant 0.000000e+00 : f32
    %14 = vector.broadcast %cst_12 : f32 to vector<32x128xf32>
    %15 = arith.maximumf %13, %14 : vector<32x128xf32>
    %c0_13 = arith.constant 0 : index
    %c0_14 = arith.constant 0 : index
    %16 = vector.load %arg6[%c0_13, %c0_14] : memref<32x1xf32, #tpu.memory_space<vmem>>, vector<32x1xf32>
    %c0_15 = arith.constant 0 : index
    %c0_16 = arith.constant 0 : index
    %17 = vector.load %arg7[%c0_15, %c0_16] : memref<1x1xf32, #tpu.memory_space<vmem>>, vector<1x1xf32>
    %18 = vector.broadcast %16 : vector<32x1xf32> to vector<32x128xf32>
    %19 = arith.mulf %18, %15 : vector<32x128xf32>
    %cst_17 = arith.constant dense<0.000000e+00> : vector<128xf32>
    %20 = vector.multi_reduction <add>, %19, %cst_17 [0] : vector<32x128xf32> to vector<128xf32>
    %21 = vector.shape_cast %20 : vector<128xf32> to vector<1x128xf32>
    %22 = vector.broadcast %17 : vector<1x1xf32> to vector<1x128xf32>
    %23 = arith.addf %21, %22 : vector<1x128xf32>
    %c0_18 = arith.constant 0 : index
    %c0_19 = arith.constant 0 : index
    %24 = vector.load %arg8[%c0_18, %c0_19] : memref<1x128xf32, #tpu.memory_space<vmem>>, vector<1x128xf32>
    %25 = arith.subf %23, %24 : vector<1x128xf32>
    %26 = arith.mulf %25, %25 : vector<1x128xf32>
    %c0_20 = arith.constant 0 : index
    %c0_21 = arith.constant 0 : index
    %27 = vector.load %arg9[%c0_20, %c0_21] : memref<1x128xf32, #tpu.memory_space<vmem>>, vector<1x128xf32>
    tpu.vector_store %arg9[%c0_20, %c0_21], %23 {strides = array<i32>} : memref<1x128xf32, #tpu.memory_space<vmem>>, vector<1x128xf32>,
    %28 = vector.shape_cast %26 : vector<1x128xf32> to vector<1x1x128xf32>
    %cst_22 = arith.constant dense<0.000000e+00> : vector<1xf32>
    %29 = vector.multi_reduction <add>, %28, %cst_22 [1, 2] : vector<1x1x128xf32> to vector<1xf32>
    %30 = vector.shape_cast %29 : vector<1xf32> to vector<1x1x1xf32>
    %31 = vector.extract %30[0, 0, 0] : f32 from vector<1x1x1xf32>
    %32 = vector.broadcast %31 : f32 to vector<1x1xf32>
    %cst_23 = arith.constant 7.812500e-03 : f32
    %33 = vector.broadcast %cst_23 : f32 to vector<1x1xf32>
    %34 = arith.mulf %32, %33 : vector<1x1xf32>
    %c0_24 = arith.constant 0 : index
    %c0_25 = arith.constant 0 : index
    %c0_26 = arith.constant 0 : index
    %35 = vector.load %arg10[%c0_24, %c0_25, %c0_26] : memref<1x1x1xf32, #tpu.memory_space<vmem>>, vector<1x1x1xf32>
    %36 = vector.shape_cast %35 : vector<1x1x1xf32> to vector<1x1xf32>
    %37 = vector.shape_cast %34 : vector<1x1xf32> to vector<1x1x1xf32>
    tpu.vector_store %arg10[%c0_24, %c0_25, %c0_26], %37 {strides = array<i32>} : memref<1x1x1xf32, #tpu.memory_space<vmem>>, vector<1x1x1xf32>,
    return
  }
  func.func @transform_0(%arg0: i32) -> (i32, i32, i32) {
    %c0_i32 = arith.constant 0 : i32
    %c0_i32_0 = arith.constant 0 : i32
    %c0_i32_1 = arith.constant 0 : i32
    return %c0_i32, %arg0, %c0_i32_0 : i32, i32, i32
  }
  func.func @transform_1(%arg0: i32) -> (i32, i32) {
    %c0_i32 = arith.constant 0 : i32
    %c0_i32_0 = arith.constant 0 : i32
    %c0_i32_1 = arith.constant 0 : i32
    return %c0_i32, %c0_i32_0 : i32, i32
  }
  func.func @transform_2(%arg0: i32) -> (i32, i32) {
    %c0_i32 = arith.constant 0 : i32
    %c0_i32_0 = arith.constant 0 : i32
    %c0_i32_1 = arith.constant 0 : i32
    return %c0_i32, %c0_i32_0 : i32, i32
  }
  func.func @transform_3(%arg0: i32) -> (i32, i32) {
    %c0_i32 = arith.constant 0 : i32
    %c0_i32_0 = arith.constant 0 : i32
    %c0_i32_1 = arith.constant 0 : i32
    return %c0_i32, %c0_i32_0 : i32, i32
  }
  func.func @transform_4(%arg0: i32) -> (i32, i32) {
    %c0_i32 = arith.constant 0 : i32
    %c0_i32_0 = arith.constant 0 : i32
    %c0_i32_1 = arith.constant 0 : i32
    return %c0_i32, %c0_i32_0 : i32, i32
  }
  func.func @transform_5(%arg0: i32) -> (i32, i32) {
    %c0_i32 = arith.constant 0 : i32
    %c0_i32_0 = arith.constant 0 : i32
    %c0_i32_1 = arith.constant 0 : i32
    return %c0_i32, %c0_i32_0 : i32, i32
  }
  func.func @transform_6(%arg0: i32) -> (i32, i32) {
    %c0_i32 = arith.constant 0 : i32
    %c0_i32_0 = arith.constant 0 : i32
    %c0_i32_1 = arith.constant 0 : i32
    return %c0_i32, %c0_i32_0 : i32, i32
  }
  func.func @transform_7(%arg0: i32) -> (i32, i32) {
    %c0_i32 = arith.constant 0 : i32
    %c0_i32_0 = arith.constant 0 : i32
    return %c0_i32, %arg0 : i32, i32
  }
  func.func @transform_8(%arg0: i32) -> (i32, i32) {
    %c0_i32 = arith.constant 0 : i32
    %c0_i32_0 = arith.constant 0 : i32
    return %c0_i32, %arg0 : i32, i32
  }
  func.func @transform_9(%arg0: i32) -> (i32, i32, i32) {
    %c0_i32 = arith.constant 0 : i32
    %c0_i32_0 = arith.constant 0 : i32
    %c0_i32_1 = arith.constant 0 : i32
    return %arg0, %c0_i32, %c0_i32_0 : i32, i32, i32
  }
}

</mosaic_0001>

<bundles_post_ra>
// kernel: tpu_custom_call.1
= control target key start
LH: loop header
LB: loop body
LE: loop exit
PB: predicated region body
PF: predicated region fallthrough
CT: control target
= control target key end

     0   :  { %s772_s0 = inlined_call_operand.vmem [shape: f32[1,128,32], index: 0, kind: input, shape index: {}]   ;;  %s773_s1 = inlined_call_operand.vmem [shape: f32[64,32], index: 1, kind: input, shape index: {}]   ;;  %s774_s2 = inlined_call_operand.vmem [shape: f32[64,1], index: 2, kind: input, shape index: {}]   ;;  %s775_s3 = inlined_call_operand.vmem [shape: f32[32,64], index: 3, kind: input, shape index: {}]   ;;  %s776_s4 = inlined_call_operand.vmem [shape: f32[32,1], index: 4, kind: input, shape index: {}]   ;;  %s777_s5 = inlined_call_operand.vmem [shape: f32[32,1], index: 5, kind: input, shape index: {}]   ;;  %s778_s6 = inlined_call_operand.<no memory space> [shape: f32[1,1], index: 6, kind: input, shape index: {}]   ;;  %s779_s7 = inlined_call_operand.vmem [shape: f32[1,128], index: 7, kind: input, shape index: {}]   ;;  %s780_s8 = inlined_call_operand.hbm [shape: f32[1,128], index: 8, kind: output, shape index: {0}]   ;;  %s781_s9 = inlined_call_operand.hbm [shape: f32[1,1,1], index: 9, kind: output, shape index: {1}]  }
   0x1   :  { %v15_v0 = vstv %s778_s6 }
   0x2   :  { %16 = vst [vmem:[#allocation2] sm:$0x1] %v15_v0 }
   0x3   :  { %17 = vsyncpa [#allocation4], 0  ;;  %v50_v1 = vld [vmem:[%s772_s0 + $0x78] sm:$0xff]  ;;  %vm107_vm0 = vcmask 261120   ;;  %v49_v2 = vld [vmem:[%s772_s0 + $0x70] sm:$0xff] }
   0x4   :  { %428 = vmatpush.xpose.msk.msra.mxu3 %vm107_vm0, %v50_v1  ;;  %427 = vmatpush.xpose.msk.msra.mxu2 %vm107_vm0, %v50_v1 }
   0x5   :  { %399 = vmatpush.xpose.msk.msra.mxu0 %vm107_vm0, %v50_v1 }
   0x6   :  { %18 = vsyncpa [#allocation6], 0  ;;  %v48_v3 = vld [vmem:[%s772_s0 + $0x68] sm:$0xff]  ;;  %v47_v4 = vld [vmem:[%s772_s0 + $0x60] sm:$0xff]  ;;  %v519_v13 = vmov 0   ;;  %vm257_vm1 = vcmask 523264  }
   0x7   :  { %v46_v5 = vld [vmem:[%s772_s0 + $0x58] sm:$0xff]  ;;  %v45_v6 = vld [vmem:[%s772_s0 + $0x50] sm:$0xff]  ;;  %v44_v7 = vld [vmem:[%s772_s0 + $0x48] sm:$0xff]  ;;  %464 = vset.pattern.permute.xlu0 %v519_v13  ;;  %465 = vset.pattern.permute.xlu1 %v519_v13  ;;  %vm352_vm2 = vcmask 1040384   ;;  %s520_s27 = smov [#allocation3]   ;;  %s374_s10 = sshll.u32 %s780_s8, 4  ;;  %s375_s10 = int_to_ptr.hbm [resolvable:$true] %s374_s10 }
   0x8   :  { %430 = vmatpush.xpose.msk.msra.mxu3 %vm107_vm0, %v49_v2  ;;  %429 = vmatpush.xpose.msk.msra.mxu2 %vm107_vm0, %v49_v2  ;;  %v43_v8 = vld [vmem:[%s772_s0 + $0x40] sm:$0xff]  ;;  %v42_v9 = vld [vmem:[%s772_s0 + $0x38] sm:$0xff]  ;;  %v64_v11 = vld [vmem:[%s774_s2 + $0x28] sm:$0xff]  ;;  %s372_s28 = sshll.u32 %s520_s27, 4  ;;  %s385_s14 = sshll.u32 %s781_s9, 4  ;;  %vm365_vm3 = vcmask 0   ;;  %s373_s28 = int_to_ptr.vmem [resolvable:$true] %s372_s28  ;;  %s386_s14 = int_to_ptr.hbm [resolvable:$true] %s385_s14 }
   0x9   :  { %400 = vmatpush.xpose.msk.msra.mxu0 %vm107_vm0, %v49_v2  ;;  %v66_v10 = vld [vmem:[%s774_s2 + $0x38] sm:$0xff]  ;;  %v41_v12 = vld [vmem:[%s772_s0 + $0x30] sm:$0xff]  ;;  %94 = vperm.xlu1 %465, %v64_v11   ;;  %v40_v14 = vld [vmem:[%s772_s0 + $0x28] sm:$0xff] }
   0xa   :  { %104 = vperm.xlu0 %464, %v66_v10   ;;  %466 = vset.pattern.permute.xlu2 %v519_v13  ;;  %v65_v15 = vld [vmem:[%s774_s2 + $0x30] sm:$0xff]  ;;  %v63_v16 = vld [vmem:[%s774_s2 + $0x20] sm:$0xff]  ;;  %v38_v18 = vld [vmem:[%s772_s0 + $0x18] sm:$0xff] }
   0xb   :  { %v39_v17 = vld [vmem:[%s772_s0 + $0x20] sm:$0xff]  ;;  %v60_v19 = vld [vmem:[%s774_s2 + $0x8] sm:$0xff]  ;;  %v37_v21 = vld [vmem:[%s772_s0 + $0x10] sm:$0xff] }
   0xc   :  { %432 = vmatpush.xpose.msk.msra.mxu3 %vm107_vm0, %v48_v3  ;;  %431 = vmatpush.xpose.msk.msra.mxu2 %vm107_vm0, %v48_v3  ;;  %v59_v20 = vld [vmem:[%s774_s2] sm:$0xff]  ;;  %v36_v22 = vld [vmem:[%s772_s0 + $0x8] sm:$0xff]  ;;  %v235_v24 = vld [vmem:[%s776_s4 + $0x10] sm:$0xff] }
   0xd   :  { %401 = vmatpush.xpose.msk.msra.mxu0 %vm107_vm0, %v48_v3  ;;  %v234_v23 = vld [vmem:[%s776_s4 + $0x8] sm:$0xff]  ;;  %v35_v25 = vld [vmem:[%s772_s0] sm:$0xff]  ;;  %v54_v26 = vld [vmem:[%s773_s1 + $0x18] sm:$0xff] }
   0xe   :  { %v52_v27 = vld [vmem:[%s773_s1 + $0x8] sm:$0xff]  ;;  %v303_v28 = vld [vmem:[%s777_s5] sm:$0xff]  ;;  %v62_v31 = vld [vmem:[%s774_s2 + $0x18] sm:$0xff] }
   0xf   :  { %v51_v29 = vld [vmem:[%s773_s1] sm:$0xff]  ;;  %v304_v30 = vld [vmem:[%s777_s5 + $0x8] sm:$0xff]  ;;  %84 = vperm.xlu2 %466, %v62_v31   ;;  %v53_v33 = vld [vmem:[%s773_s1 + $0x10] sm:$0xff] }
  0x10   :  { %434 = vmatpush.xpose.msk.msra.mxu3 %vm107_vm0, %v47_v4  ;;  %433 = vmatpush.xpose.msk.msra.mxu2 %vm107_vm0, %v47_v4  ;;  %v55_v32 = vld [vmem:[%s773_s1 + $0x20] sm:$0xff]  ;;  %v61_v34 = vld [vmem:[%s774_s2 + $0x10] sm:$0xff]  ;;  %v306_v35 = vld [vmem:[%s777_s5 + $0x18] sm:$0xff] }
  0x11   :  { %402 = vmatpush.xpose.msk.msra.mxu0 %vm107_vm0, %v47_v4  ;;  %89 = vperm.xlu1 %465, %v63_v16   ;;  %v307_v36 = vld [vmem:[#allocation2] sm:$0x1]  ;;  %v56_v37 = vld [vmem:[%s773_s1 + $0x28] sm:$0xff]  ;;  %v57_v39 = vld [vmem:[%s773_s1 + $0x30] sm:$0xff] }
  0x12   :  { %99 = vperm.xlu0 %464, %v65_v15   ;;  %v233_v38 = vld [vmem:[%s776_s4] sm:$0xff]  ;;  %v236_v40 = vld [vmem:[%s776_s4 + $0x18] sm:$0xff]  ;;  %v305_v42 = vld [vmem:[%s777_s5 + $0x10] sm:$0xff] }
  0x13   :  { %v58_v41 = vld [vmem:[%s773_s1 + $0x38] sm:$0xff]  ;;  %v229_v11 = vld [vmem:[%s775_s3] sm:$0xff]  ;;  %v231_v13 = vld [vmem:[%s775_s3 + $0x10] sm:$0xff] }
  0x14   :  { %436 = vmatpush.xpose.msk.msra.mxu3 %vm107_vm0, %v46_v5  ;;  %435 = vmatpush.xpose.msk.msra.mxu2 %vm107_vm0, %v46_v5 }
  0x15   :  { %403 = vmatpush.xpose.msk.msra.mxu0 %vm107_vm0, %v46_v5 }
  0x17   :  { %79 = vperm.xlu2 %466, %v61_v34  }
  0x18   :  { %438 = vmatpush.xpose.msk.msra.mxu3 %vm107_vm0, %v45_v6  ;;  %437 = vmatpush.xpose.msk.msra.mxu2 %vm107_vm0, %v45_v6 }
  0x19   :  { %404 = vmatpush.xpose.msk.msra.mxu0 %vm107_vm0, %v45_v6  ;;  %69 = vperm.xlu1 %465, %v59_v20  }
  0x1a   :  { %74 = vperm.xlu0 %464, %v60_v19  }
  0x1c   :  { %440 = vmatpush.xpose.msk.msra.mxu3 %vm107_vm0, %v44_v7  ;;  %439 = vmatpush.xpose.msk.msra.mxu2 %vm107_vm0, %v44_v7 }
  0x1d   :  { %405 = vmatpush.xpose.msk.msra.mxu0 %vm107_vm0, %v44_v7 }
  0x1f   :  { %239 = vperm.xlu2 %466, %v233_v38  }
  0x20   :  { %442 = vmatpush.xpose.msk.msra.mxu3 %vm107_vm0, %v43_v8  ;;  %441 = vmatpush.xpose.msk.msra.mxu2 %vm107_vm0, %v43_v8 }
  0x21   :  { %406 = vmatpush.xpose.msk.msra.mxu0 %vm107_vm0, %v43_v8  ;;  %249 = vperm.xlu1 %465, %v235_v24  }
  0x22   :  { %244 = vperm.xlu0 %464, %v234_v23  }
  0x24   :  { %444 = vmatpush.xpose.msk.msra.mxu3 %vm107_vm0, %v42_v9  ;;  %443 = vmatpush.xpose.msk.msra.mxu2 %vm107_vm0, %v42_v9 }
  0x25   :  { %407 = vmatpush.xpose.msk.msra.mxu0 %vm107_vm0, %v42_v9 }
  0x27   :  { %254 = vperm.xlu2 %466, %v236_v40  }
  0x28   :  { %446 = vmatpush.xpose.msk.msra.mxu3 %vm107_vm0, %v41_v12  ;;  %445 = vmatpush.xpose.msk.msra.mxu2 %vm107_vm0, %v41_v12 }
  0x29   :  { %408 = vmatpush.xpose.msk.msra.mxu0 %vm107_vm0, %v41_v12  ;;  %315 = vperm.xlu1 %465, %v304_v30   ;;  %v230_v12 = vld [vmem:[%s775_s3 + $0x8] sm:$0xff] }
  0x2a   :  { %310 = vperm.xlu0 %464, %v303_v28  }
  0x2c   :  { %448 = vmatpush.xpose.msk.msra.mxu3 %vm107_vm0, %v40_v14  ;;  %447 = vmatpush.xpose.msk.msra.mxu2 %vm107_vm0, %v40_v14 }
  0x2d   :  { %409 = vmatpush.xpose.msk.msra.mxu0 %vm107_vm0, %v40_v14  ;;  %v232_v14 = vld [vmem:[%s775_s3 + $0x18] sm:$0xff] }
  0x2f   :  { %320 = vperm.xlu2 %466, %v305_v42  }
  0x30   :  { %450 = vmatpush.xpose.msk.msra.mxu3 %vm107_vm0, %v39_v17  ;;  %449 = vmatpush.xpose.msk.msra.mxu2 %vm107_vm0, %v39_v17 }
  0x31   :  { %410 = vmatpush.xpose.msk.msra.mxu0 %vm107_vm0, %v39_v17  ;;  %343 = vperm.xlu1 %465, %v307_v36  }
  0x32   :  { %325 = vperm.xlu0 %464, %v306_v35  }
  0x34   :  { %452 = vmatpush.xpose.msk.msra.mxu3 %vm107_vm0, %v38_v18  ;;  %451 = vmatpush.xpose.msk.msra.mxu2 %vm107_vm0, %v38_v18 }
  0x35   :  { %411 = vmatpush.xpose.msk.msra.mxu0 %vm107_vm0, %v38_v18 }
  0x38   :  { %454 = vmatpush.xpose.msk.msra.mxu3 %vm107_vm0, %v37_v21  ;;  %453 = vmatpush.xpose.msk.msra.mxu2 %vm107_vm0, %v37_v21 }
  0x39   :  { %412 = vmatpush.xpose.msk.msra.mxu0 %vm107_vm0, %v37_v21 }
  0x3c   :  { %456 = vmatpush.xpose.msk.msra.mxu3 %vm107_vm0, %v36_v22  ;;  %455 = vmatpush.xpose.msk.msra.mxu2 %vm107_vm0, %v36_v22 }
  0x3d   :  { %413 = vmatpush.xpose.msk.msra.mxu0 %vm107_vm0, %v36_v22 }
  0x40   :  { %458 = vmatpush.xpose.msk.msra.mxu3 %vm107_vm0, %v35_v25  ;;  %457 = vmatpush.xpose.msk.msra.mxu2 %vm107_vm0, %v35_v25 }
  0x41   :  { %414 = vmatpush.xpose.msk.msra.mxu0 %vm107_vm0, %v35_v25 }
  0x43   :  { %418 = vmatmul.msk.f32.vlgmr.msra.gmra.mxu3 %vm107_vm0, %v54_v26  ;;  %416 = vmatmul.msk.f32.vlgmr.msra.gmra.mxu2 %vm107_vm0, %v52_v27 }
  0x44   :  { %415 = vmatmul.msk.f32.vlgmr.msra.gmra.mxu0 %vm107_vm0, %v51_v29 }
  0x4b   :  { %419 = vmatmul.msk.f32.gmra.mxu3 %vm107_vm0, %v55_v32  ;;  %417 = vmatmul.msk.f32.gmra.mxu2 %vm107_vm0, %v53_v33 }
  0x53   :  { %420 = vmatmul.msk.f32.gmra.mxu3 %vm107_vm0, %v56_v37 }
  0x5b   :  { %421 = vmatmul.msk.f32.gmra.mxu3 %vm107_vm0, %v57_v39 }
  0x63   :  { %422 = vmatmul.msk.f32.gmra.mxu3 %vm107_vm0, %v58_v41 }
  0x69   :  { %v85_v50 = vpop.permute.xlu2 %84 }
  0x71   :  { %v80_v63 = vpop.permute.xlu2 %79 }
  0x79   :  { %v240_v16 = vpop.permute.xlu2 %239 }
  0x7b   :  { %v95_v47 = vpop.permute.xlu1 %94 }
  0x7c   :  { %v105_v46 = vpop.permute.xlu0 %104 }
  0x81   :  { %v255_v20 = vpop.permute.xlu2 %254 }
  0x83   :  { %v90_v55 = vpop.permute.xlu1 %89 }
  0x84   :  { %v100_v51 = vpop.permute.xlu0 %99 }
  0x89   :  { %v321_v31 = vpop.permute.xlu2 %320 }
  0x8b   :  { %v70_v6 = vpop.permute.xlu1 %69 }
  0x8c   :  { %v75_v2 = vpop.permute.xlu0 %74 }
  0x93   :  { %v250_v19 = vpop.permute.xlu1 %249 }
  0x94   :  { %v245_v17 = vpop.permute.xlu0 %244 }
  0x9b   :  { %v316_v29 = vpop.permute.xlu1 %315 }
  0x9c   :  { %v311_v25 = vpop.permute.xlu0 %310 }
  0xa4   :  { %v326_v38 = vpop.permute.xlu0 %325 }
  0xc1   :  { %v197_v3 = vpop.f32.mrf.mxu0 }
  0xc2   :  { %v198_v7 = vadd.f32 %v197_v3, %v70_v6 }
  0xc4   :  { %v221_v10 = vmax.f32 %v198_v7, 0.0 }
  0xc6   :  { %v206_v43 = vpop.f32.mrf.mxu3  ;;  %v200_v49 = vpop.f32.mrf.mxu2 }
  0xc7   :  { %v207_v61 = vadd.f32 %v206_v43, %v85_v50  ;;  %v201_v5 = vadd.f32 %v200_v49, %v75_v2  ;;  %v348_v50 = vld [vmem:[%s779_s7] sm:$0x1]  ;;  %s521_s7 = smov [#allocation5]  }
  0xc8   :  { %s383_s11 = sshll.u32 %s521_s7, 4  ;;  %s384_s11 = int_to_ptr.vmem [resolvable:$true] %s383_s11 }
  0xc9   :  { %v224_v4 = vmax.f32 %v207_v61, 0.0  ;;  %v222_v9 = vmax.f32 %v201_v5, 0.0 }
  0xce   :  { %v209_v44 = vpop.f32.mrf.mxu3  ;;  %v203_v60 = vpop.f32.mrf.mxu2 }
  0xcf   :  { %v210_v58 = vadd.f32 %v209_v44, %v90_v55  ;;  %v204_v1 = vadd.f32 %v203_v60, %v80_v63 }
  0xd1   :  { %v225_v0 = vmax.f32 %v210_v58, 0.0  ;;  %v223_v8 = vmax.f32 %v204_v1, 0.0 }
  0xd6   :  { %v212_v45 = vpop.f32.mrf.mxu3 }
  0xd7   :  { %v213_v56 = vadd.f32 %v212_v45, %v95_v47 }
  0xd9   :  { %v226_v62 = vmax.f32 %v213_v56, 0.0 }
  0xde   :  { %v215_v48 = vpop.f32.mrf.mxu3 }
  0xdf   :  { %v216_v53 = vadd.f32 %v215_v48, %v100_v51 }
  0xe1   :  { %v227_v59 = vmax.f32 %v216_v53, 0.0 }
  0xe6   :  { %v218_v52 = vpop.f32.mrf.mxu3 }
  0xe7   :  { %v219_v54 = vadd.f32 %v218_v52, %v105_v46  ;;  %v344_v46 = vpop.permute.xlu1 %343 }
  0xe8   :  { %v346_v48 = vperm.slane %v344_v46, 0 }
  0xe9   :  { %v228_v57 = vmax.f32 %v219_v54, 0.0 }
  0xeb   :  { %278 = vmatpush.msra.mxu1 %v228_v57 }
  0xed   :  { %279 = vmatpush.msra.mxu1 %v227_v59 }
  0xef   :  { %280 = vmatpush.msra.mxu1 %v226_v62 }
  0xf1   :  { %281 = vmatpush.msra.mxu1 %v225_v0 }
  0xf3   :  { %282 = vmatpush.msra.mxu1 %v224_v4 }
  0xf5   :  { %283 = vmatpush.msra.mxu1 %v223_v8 }
  0xf7   :  { %284 = vmatpush.msra.mxu1 %v222_v9 }
  0xf9   :  { %285 = vmatpush.msra.mxu1 %v221_v10 }
  0xfa   :  { %423 = vmatmul.msk.f32.vlgmr.msra.gmra.mxu1 %vm257_vm1, %v229_v11 }
 0x102   :  { %424 = vmatmul.msk.f32.gmra.mxu1 %vm257_vm1, %v230_v12 }
 0x10a   :  { %425 = vmatmul.msk.f32.gmra.mxu1 %vm257_vm1, %v231_v13 }
 0x112   :  { %426 = vmatmul.msk.f32.gmra.mxu1 %vm257_vm1, %v232_v14 }
 0x177   :  { %v287_v15 = vpop.f32.mrf.mxu1 }
 0x178   :  { %v288_v23 = vadd.f32 %v287_v15, %v240_v16 }
 0x17a   :  { %v299_v27 = vmax.f32 %v288_v23, 0.0 }
 0x17c   :  { %v328_v33 = vmul.f32 %v311_v25, %v299_v27 }
 0x17f   :  { %v290_v18 = vpop.f32.mrf.mxu1 }
 0x180   :  { %v291_v21 = vadd.f32 %v290_v18, %v245_v17 }
 0x182   :  { %v300_v26 = vmax.f32 %v291_v21, 0.0 }
 0x184   :  { %v329_v30 = vmul.f32 %v316_v29, %v300_v26 }
 0x186   :  { %v332_v36 = vadd.f32 %v329_v30, %v328_v33 }
 0x187   :  { %v293_v22 = vpop.f32.mrf.mxu1 }
 0x188   :  { %v294_v24 = vadd.f32 %v293_v22, %v250_v19 }
 0x18a   :  { %v301_v28 = vmax.f32 %v294_v24, 0.0 }
 0x18c   :  { %v330_v34 = vmul.f32 %v321_v31, %v301_v28 }
 0x18e   :  { %v333_v39 = vadd.f32 %v332_v36, %v330_v34 }
 0x18f   :  { %v296_v32 = vpop.f32.mrf.mxu1 }
 0x190   :  { %v297_v35 = vadd.f32 %v296_v32, %v255_v20 }
 0x192   :  { %v302_v37 = vmax.f32 %v297_v35, 0.0 }
 0x194   :  { %v331_v40 = vmul.f32 %v326_v38, %v302_v37 }
 0x196   :  { %v334_v41 = vadd.f32 %v333_v39, %v331_v40 }
 0x198   :  { %v335_v42 = vrot.slane %v334_v41, 4 }
 0x19a   :  { %v336_v43 = vadd.f32 %v335_v42, %v334_v41 }
 0x19c   :  { %v337_v44 = vrot.slane %v336_v43, 2 }
 0x19e   :  { %v338_v45 = vadd.f32 %v337_v44, %v336_v43 }
 0x1a0   :  { %v339_v47 = vrot.slane %v338_v45, 1 }
 0x1a2   :  { %v340_v49 = vadd.f32 %v339_v47, %v338_v45 }
 0x1a4   :  { %v347_v51 = vadd.f32 %v346_v48, %v340_v49 }
 0x1a6   :  { %v349_v52 = vsub.f32 %v347_v51, %v348_v50  ;;  %351 = vst [vmem:[#allocation3] sm:$0x1] %v347_v51 }
 0x1a7   :  { %377 = dma.vmem_to_hbm [thread:$0]  %s373_s28, 16, %s375_s10, [#allocation4]  }
 0x1a8   :  { %v350_v53 = vmul.f32 %v349_v52, %v349_v52 }
 0x1aa   :  { %v353_v54 = vsel %vm352_vm2, %v350_v53, 0.0 }
 0x1ab   :  { %354 = vadd.xlane.f32.xlu2 %v353_v54 }
 0x21e   :  { %v355_v55 = vpop.xlane.xlu2 %354 }
 0x21f   :  { %v356_v56 = vrot.slane %v355_v55, 4 }
 0x221   :  { %v357_v57 = vadd.f32 %v356_v56, %v355_v55 }
 0x223   :  { %v358_v58 = vrot.slane %v357_v57, 2 }
 0x225   :  { %v359_v59 = vadd.f32 %v358_v58, %v357_v57 }
 0x227   :  { %v360_v60 = vrot.slane %v359_v59, 1 }
 0x229   :  { %v361_v61 = vadd.f32 %v360_v60, %v359_v59 }
 0x22b   :  { %459 = vpush %v361_v61 }
 0x25c   :  { %s460_s6 = spop %459 }
 0x25d   :  { %v363_v62 = vstv %s460_s6 }
 0x25e   :  { %v364_v63 = vmul.f32 0.0078125, %v363_v62 }
 0x260   :  { %366 = vst.msk [vmem:[#allocation5] sm:$0x1] %vm365_vm3, %v364_v63 }
 0x261   :  { %388 = dma.vmem_to_hbm [thread:$0]  %s384_s11, 16, %s386_s14, [#allocation6]  }
 0x262   :  { %515 = dma.done.wait [#allocation4], 16  }
 0x263   :  { %516 = vsyncadd [#allocation4], 4294967280 }
 0x264   :  { %517 = dma.done.wait [#allocation6], 16  }
 0x265   :  { %518 = vsyncadd [#allocation6], 4294967280 }
 0x266   :  { %397 = vsyncpa [#allocation4], 1 }
 0x267   :  { %398 = vsyncpa [#allocation6], 1 }

</bundles_post_ra>
